<compile_context>
chip_gen: v7x
topology: tpu7x:2x2x1
jax: 0.10.0
libtpu: 0.0.40
codegen_flags: <defaults>
</compile_context>

<pallas_src>
import math

import jax
import jax.numpy as jnp
from jax.experimental import pallas as pl
from jax.experimental.pallas import tpu as pltpu

BN_EPS = 1e-5
OUT_FEATURES = 10
PADDED_OUT = 128          # lane-dense output width
MAX_TILE_B = 512          # batch tile (sweepable; fits well under scoped VMEM)


def _round_up(n, m):
    return ((n + m - 1) // m) * m


def fmnist_kernel(x_ref,
                  w1_ref, b1_ref,
                  w2_ref, b2_ref,
                  w3_ref, b3_ref,
                  w4_ref, b4_ref,
                  o_ref):
    # x arrives as bf16 (cast in the wrapper to halve HBM read traffic).
    x = x_ref[...]

    h = jnp.dot(x, w1_ref[...], preferred_element_type=jnp.float32) + b1_ref[...]
    h = jnp.dot(h.astype(jnp.bfloat16), w2_ref[...],
                preferred_element_type=jnp.float32) + b2_ref[...]
    h = jnp.dot(h.astype(jnp.bfloat16), w3_ref[...],
                preferred_element_type=jnp.float32) + b3_ref[...]
    # fc4 has the BN scale folded into its (padded, lane-dense) weights/bias.
    h = jnp.dot(h.astype(jnp.bfloat16), w4_ref[...],
                preferred_element_type=jnp.float32) + b4_ref[...]

    # ReLU epilogue in f32.
    o_ref[...] = jnp.maximum(h, 0.0).astype(o_ref.dtype)


def prepare_params(params):
    """Fold BN scale into fc4, pad fc4 to 128 lanes, cast weights to bf16.

    Input params: dict name -> (W [in, out] f32, b [out] f32).
    """
    scale = 1.0 / math.sqrt(1.0 + BN_EPS)

    w1, b1 = params["fc1"]
    w2, b2 = params["fc2"]
    w3, b3 = params["fc3"]
    w4, b4 = params["fc4"]

    # Fold eval-mode batch_norm (mean=0, var=1, no affine) into the last layer.
    w4 = w4 * scale
    b4 = b4 * scale

    # Pad the last layer to a lane-dense 128-wide output.
    w4 = jnp.pad(w4, ((0, 0), (0, PADDED_OUT - OUT_FEATURES)))
    b4 = jnp.pad(b4, (0, PADDED_OUT - OUT_FEATURES))

    def prep(w, b):
        return w.astype(jnp.bfloat16), b.reshape(1, -1).astype(jnp.float32)

    return (*prep(w1, b1), *prep(w2, b2), *prep(w3, b3), *prep(w4, b4))


def fmnist_forward(x, params):
    """x: [B, 784] float32.  params: dict of (W [in,out], b [out]) per layer."""
    B, F_in = x.shape
    assert F_in == 28 * 28

    prepped = prepare_params(params)

    # Batch tiling: tile must be a multiple of 16 (bf16 sublane packing); pad
    # the batch up to a whole number of tiles so every grid block is full.
    tile_b = min(MAX_TILE_B, _round_up(B, 16))
    padded_B = _round_up(B, tile_b)
    x_p = jnp.pad(x, ((0, padded_B - B), (0, 0))).astype(jnp.bfloat16)

    num_tiles = padded_B // tile_b

    resident = lambda i: (0, 0)  # weights/biases: same block every step
    in_specs = [
        pl.BlockSpec((tile_b, F_in), lambda i: (i, 0)),      # x tile
        pl.BlockSpec((F_in, 64), resident),                  # w1
        pl.BlockSpec((1, 64), resident),                     # b1
        pl.BlockSpec((64, 128), resident),                   # w2
        pl.BlockSpec((1, 128), resident),                    # b2
        pl.BlockSpec((128, 64), resident),                   # w3
        pl.BlockSpec((1, 64), resident),                     # b3
        pl.BlockSpec((64, PADDED_OUT), resident),            # w4 (padded)
        pl.BlockSpec((1, PADDED_OUT), resident),             # b4 (padded)
    ]
    out_specs = pl.BlockSpec((tile_b, PADDED_OUT), lambda i: (i, 0))

    flops = 2 * padded_B * (784 * 64 + 64 * 128 + 128 * 64 + 64 * PADDED_OUT)
    weight_bytes = (784 * 64 + 64 * 128 + 128 * 64 + 64 * PADDED_OUT) * 2 \
                   + (64 + 128 + 64 + PADDED_OUT) * 4
    bytes_accessed = padded_B * 784 * 2 + weight_bytes + padded_B * PADDED_OUT * 4

    out = pl.pallas_call(
        fmnist_kernel,
        out_shape=jax.ShapeDtypeStruct((padded_B, PADDED_OUT), jnp.float32),
        grid=(num_tiles,),
        in_specs=in_specs,
        out_specs=out_specs,
        compiler_params=pltpu.CompilerParams(
            dimension_semantics=("parallel",)),
        cost_estimate=pl.CostEstimate(
            flops=flops, transcendentals=0, bytes_accessed=bytes_accessed),
    )(x_p, *prepped)

    # Strip batch padding and the lane padding of the last layer.
    return out[:B, :OUT_FEATURES]


def init_params(key):
    """Deterministic init mimicking nn.Linear's uniform(-1/sqrt(fan_in), +).

    Weights stored as [in_features, out_features] (transposed vs. PyTorch).
    """
    sizes = [(28 * 28, 64), (64, 128), (128, 64), (64, 10)]
    names = ["fc1", "fc2", "fc3", "fc4"]
    params = {}
    for name, (fan_in, fan_out) in zip(names, sizes):
        key, kw, kb = jax.random.split(key, 3)
        bound = 1.0 / math.sqrt(fan_in)
        w = jax.random.uniform(kw, (fan_in, fan_out), jnp.float32, -bound, bound)
        b = jax.random.uniform(kb, (fan_out,), jnp.float32, -bound, bound)
        params[name] = (w, b)
    return params


if __name__ == "__main__":
    key = jax.random.PRNGKey(0)
    key, kx = jax.random.split(key)

    batch = 2
    x = jax.random.normal(kx, (batch, 28 * 28), jnp.float32)

    params = init_params(key)

    out = fmnist_forward(x, params)
    out = jax.block_until_ready(out)

    # sanity: correct shape and ReLU non-negativity
    assert out.shape == (batch, OUT_FEATURES)
    assert bool(jnp.all(out >= 0.0))

    # cross-check against a plain-JAX f32 reference of the module semantics
    # (tolerance loosened because the kernel uses bf16 inputs/weights with
    #  f32 accumulation).
    def ref(x, p):
        h = x
        for name in ["fc1", "fc2", "fc3", "fc4"]:
            w, b = p[name]
            h = h @ w + b
        h = h / jnp.sqrt(1.0 + BN_EPS)
        return jnp.maximum(h, 0.0)

    r = ref(x, params)
    assert bool(jnp.allclose(out, r, atol=2e-2, rtol=2e-2)), (out, r)

    print("KERNEL_OK")
</pallas_src>

<mosaic_0001>
module attributes {stable_mosaic.version = 11 : i64} {
  func.func @fmnist_kernel(%arg0: i32, %arg1: memref<16x784xbf16, #tpu.memory_space<vmem>>, %arg2: memref<784x64xbf16, #tpu.memory_space<vmem>>, %arg3: memref<1x64xf32, #tpu.memory_space<vmem>>, %arg4: memref<64x128xbf16, #tpu.memory_space<vmem>>, %arg5: memref<1x128xf32, #tpu.memory_space<vmem>>, %arg6: memref<128x64xbf16, #tpu.memory_space<vmem>>, %arg7: memref<1x64xf32, #tpu.memory_space<vmem>>, %arg8: memref<64x128xbf16, #tpu.memory_space<vmem>>, %arg9: memref<1x128xf32, #tpu.memory_space<vmem>>, %arg10: memref<16x128xf32, #tpu.memory_space<vmem>>) attributes {dimension_semantics = [#tpu.dimension_semantics<parallel>], iteration_bounds = array<i64: 1>, scalar_prefetch = 0 : i64, scratch_operands = 0 : i64, tpu.core_type = #tpu.core_type<tc>, window_params = [{transform_indices = @transform_0, window_bounds = array<i64: 16, 784>}, {pipeline_mode = #tpu.pipeline_mode<synchronous>, transform_indices = @transform_1, window_bounds = array<i64: 784, 64>}, {pipeline_mode = #tpu.pipeline_mode<synchronous>, transform_indices = @transform_2, window_bounds = array<i64: 1, 64>}, {pipeline_mode = #tpu.pipeline_mode<synchronous>, transform_indices = @transform_3, window_bounds = array<i64: 64, 128>}, {pipeline_mode = #tpu.pipeline_mode<synchronous>, transform_indices = @transform_4, window_bounds = array<i64: 1, 128>}, {pipeline_mode = #tpu.pipeline_mode<synchronous>, transform_indices = @transform_5, window_bounds = array<i64: 128, 64>}, {pipeline_mode = #tpu.pipeline_mode<synchronous>, transform_indices = @transform_6, window_bounds = array<i64: 1, 64>}, {pipeline_mode = #tpu.pipeline_mode<synchronous>, transform_indices = @transform_7, window_bounds = array<i64: 64, 128>}, {pipeline_mode = #tpu.pipeline_mode<synchronous>, transform_indices = @transform_8, window_bounds = array<i64: 1, 128>}, {transform_indices = @transform_9, window_bounds = array<i64: 16, 128>}]} {
    %c0 = arith.constant 0 : index
    %c0_0 = arith.constant 0 : index
    %0 = vector.load %arg1[%c0, %c0_0] : memref<16x784xbf16, #tpu.memory_space<vmem>>, vector<16x784xbf16>
    %c0_1 = arith.constant 0 : index
    %c0_2 = arith.constant 0 : index
    %1 = vector.load %arg2[%c0_1, %c0_2] : memref<784x64xbf16, #tpu.memory_space<vmem>>, vector<784x64xbf16>
    %cst = arith.constant dense<0.000000e+00> : vector<16x64xf32>
    %2 = tpu.matmul %0, %1, %cst {dimension_numbers = #tpu.dot_dimension_numbers<[1], [0], [0], [1], [0, 0, 1, 1], [], []>} : vector<16x784xbf16>, vector<784x64xbf16>, vector<16x64xf32> -> vector<16x64xf32>
    %c0_3 = arith.constant 0 : index
    %c0_4 = arith.constant 0 : index
    %3 = vector.load %arg3[%c0_3, %c0_4] : memref<1x64xf32, #tpu.memory_space<vmem>>, vector<1x64xf32>
    %4 = vector.broadcast %3 : vector<1x64xf32> to vector<16x64xf32>
    %5 = arith.addf %2, %4 : vector<16x64xf32>
    %6 = arith.truncf %5 : vector<16x64xf32> to vector<16x64xbf16>
    %c0_5 = arith.constant 0 : index
    %c0_6 = arith.constant 0 : index
    %7 = vector.load %arg4[%c0_5, %c0_6] : memref<64x128xbf16, #tpu.memory_space<vmem>>, vector<64x128xbf16>
    %cst_7 = arith.constant dense<0.000000e+00> : vector<16x128xf32>
    %8 = tpu.matmul %6, %7, %cst_7 {dimension_numbers = #tpu.dot_dimension_numbers<[1], [0], [0], [1], [0, 0, 1, 1], [], []>} : vector<16x64xbf16>, vector<64x128xbf16>, vector<16x128xf32> -> vector<16x128xf32>
    %c0_8 = arith.constant 0 : index
    %c0_9 = arith.constant 0 : index
    %9 = vector.load %arg5[%c0_8, %c0_9] : memref<1x128xf32, #tpu.memory_space<vmem>>, vector<1x128xf32>
    %10 = vector.broadcast %9 : vector<1x128xf32> to vector<16x128xf32>
    %11 = arith.addf %8, %10 : vector<16x128xf32>
    %12 = arith.truncf %11 : vector<16x128xf32> to vector<16x128xbf16>
    %c0_10 = arith.constant 0 : index
    %c0_11 = arith.constant 0 : index
    %13 = vector.load %arg6[%c0_10, %c0_11] : memref<128x64xbf16, #tpu.memory_space<vmem>>, vector<128x64xbf16>
    %cst_12 = arith.constant dense<0.000000e+00> : vector<16x64xf32>
    %14 = tpu.matmul %12, %13, %cst_12 {dimension_numbers = #tpu.dot_dimension_numbers<[1], [0], [0], [1], [0, 0, 1, 1], [], []>} : vector<16x128xbf16>, vector<128x64xbf16>, vector<16x64xf32> -> vector<16x64xf32>
    %c0_13 = arith.constant 0 : index
    %c0_14 = arith.constant 0 : index
    %15 = vector.load %arg7[%c0_13, %c0_14] : memref<1x64xf32, #tpu.memory_space<vmem>>, vector<1x64xf32>
    %16 = vector.broadcast %15 : vector<1x64xf32> to vector<16x64xf32>
    %17 = arith.addf %14, %16 : vector<16x64xf32>
    %18 = arith.truncf %17 : vector<16x64xf32> to vector<16x64xbf16>
    %c0_15 = arith.constant 0 : index
    %c0_16 = arith.constant 0 : index
    %19 = vector.load %arg8[%c0_15, %c0_16] : memref<64x128xbf16, #tpu.memory_space<vmem>>, vector<64x128xbf16>
    %cst_17 = arith.constant dense<0.000000e+00> : vector<16x128xf32>
    %20 = tpu.matmul %18, %19, %cst_17 {dimension_numbers = #tpu.dot_dimension_numbers<[1], [0], [0], [1], [0, 0, 1, 1], [], []>} : vector<16x64xbf16>, vector<64x128xbf16>, vector<16x128xf32> -> vector<16x128xf32>
    %c0_18 = arith.constant 0 : index
    %c0_19 = arith.constant 0 : index
    %21 = vector.load %arg9[%c0_18, %c0_19] : memref<1x128xf32, #tpu.memory_space<vmem>>, vector<1x128xf32>
    %22 = vector.broadcast %21 : vector<1x128xf32> to vector<16x128xf32>
    %23 = arith.addf %20, %22 : vector<16x128xf32>
    %cst_20 = arith.constant 0.000000e+00 : f32
    %24 = vector.broadcast %cst_20 : f32 to vector<16x128xf32>
    %25 = arith.maximumf %23, %24 : vector<16x128xf32>
    %c0_21 = arith.constant 0 : index
    %c0_22 = arith.constant 0 : index
    %26 = vector.load %arg10[%c0_21, %c0_22] : memref<16x128xf32, #tpu.memory_space<vmem>>, vector<16x128xf32>
    tpu.vector_store %arg10[%c0_21, %c0_22], %25 {strides = array<i32>} : memref<16x128xf32, #tpu.memory_space<vmem>>, vector<16x128xf32>,
    return
  }
  func.func @transform_0(%arg0: i32) -> (i32, i32) {
    %c0_i32 = arith.constant 0 : i32
    %c0_i32_0 = arith.constant 0 : i32
    return %arg0, %c0_i32 : i32, i32
  }
  func.func @transform_1(%arg0: i32) -> (i32, i32) {
    %c0_i32 = arith.constant 0 : i32
    %c0_i32_0 = arith.constant 0 : i32
    %c0_i32_1 = arith.constant 0 : i32
    return %c0_i32, %c0_i32_0 : i32, i32
  }
  func.func @transform_2(%arg0: i32) -> (i32, i32) {
    %c0_i32 = arith.constant 0 : i32
    %c0_i32_0 = arith.constant 0 : i32
    %c0_i32_1 = arith.constant 0 : i32
    return %c0_i32, %c0_i32_0 : i32, i32
  }
  func.func @transform_3(%arg0: i32) -> (i32, i32) {
    %c0_i32 = arith.constant 0 : i32
    %c0_i32_0 = arith.constant 0 : i32
    %c0_i32_1 = arith.constant 0 : i32
    return %c0_i32, %c0_i32_0 : i32, i32
  }
  func.func @transform_4(%arg0: i32) -> (i32, i32) {
    %c0_i32 = arith.constant 0 : i32
    %c0_i32_0 = arith.constant 0 : i32
    %c0_i32_1 = arith.constant 0 : i32
    return %c0_i32, %c0_i32_0 : i32, i32
  }
  func.func @transform_5(%arg0: i32) -> (i32, i32) {
    %c0_i32 = arith.constant 0 : i32
    %c0_i32_0 = arith.constant 0 : i32
    %c0_i32_1 = arith.constant 0 : i32
    return %c0_i32, %c0_i32_0 : i32, i32
  }
  func.func @transform_6(%arg0: i32) -> (i32, i32) {
    %c0_i32 = arith.constant 0 : i32
    %c0_i32_0 = arith.constant 0 : i32
    %c0_i32_1 = arith.constant 0 : i32
    return %c0_i32, %c0_i32_0 : i32, i32
  }
  func.func @transform_7(%arg0: i32) -> (i32, i32) {
    %c0_i32 = arith.constant 0 : i32
    %c0_i32_0 = arith.constant 0 : i32
    %c0_i32_1 = arith.constant 0 : i32
    return %c0_i32, %c0_i32_0 : i32, i32
  }
  func.func @transform_8(%arg0: i32) -> (i32, i32) {
    %c0_i32 = arith.constant 0 : i32
    %c0_i32_0 = arith.constant 0 : i32
    %c0_i32_1 = arith.constant 0 : i32
    return %c0_i32, %c0_i32_0 : i32, i32
  }
  func.func @transform_9(%arg0: i32) -> (i32, i32) {
    %c0_i32 = arith.constant 0 : i32
    %c0_i32_0 = arith.constant 0 : i32
    return %arg0, %c0_i32 : i32, i32
  }
}

</mosaic_0001>

<bundles_post_ra>
// kernel: tpu_custom_call.1
= control target key start
LH: loop header
LB: loop body
LE: loop exit
PB: predicated region body
PF: predicated region fallthrough
CT: control target
= control target key end

     0   :  { %v1266_v38 = vmov 0.0   ;;  %vm1267_vm0 = vmmov 0   ;;  %vm476_vm1 = vcmask 130048   ;;  %s1588_s0 = inlined_call_operand.vmem [shape: bf16[16,784], index: 0, kind: input, shape index: {}]   ;;  %s1589_s1 = inlined_call_operand.vmem [shape: bf16[784,64], index: 1, kind: input, shape index: {}]   ;;  %s1590_s2 = inlined_call_operand.vmem [shape: f32[1,64], index: 2, kind: input, shape index: {}]   ;;  %s1591_s3 = inlined_call_operand.vmem [shape: bf16[64,128], index: 3, kind: input, shape index: {}]   ;;  %s1592_s4 = inlined_call_operand.vmem [shape: f32[1,128], index: 4, kind: input, shape index: {}]   ;;  %s1593_s5 = inlined_call_operand.vmem [shape: bf16[128,64], index: 5, kind: input, shape index: {}]   ;;  %s1594_s6 = inlined_call_operand.vmem [shape: f32[1,64], index: 6, kind: input, shape index: {}]   ;;  %s1595_s7 = inlined_call_operand.vmem [shape: bf16[64,128], index: 7, kind: input, shape index: {}]   ;;  %s1596_s8 = inlined_call_operand.vmem [shape: f32[1,128], index: 8, kind: input, shape index: {}]   ;;  %s1597_s9 = inlined_call_operand.hbm [shape: f32[16,128], index: 9, kind: output, shape index: {}]  }
   0x1   :  { %v1167_v0 = vld [vmem:[%s1589_s1 + $0x40] sm:$0xff]   ;;  %v1171_v4 = vld [vmem:[%s1589_s1 + $0x48] sm:$0xff]   ;;  %v1175_v8 = vld [vmem:[%s1589_s1 + $0x50] sm:$0xff]  }
   0x2   :  { %v1168_v1 = vld [vmem:[%s1589_s1] sm:$0xff]   ;;  %1025 = vmatprep.subr.bf16.mxu0 %v1167_v0  ;;  %v1172_v5 = vld [vmem:[%s1589_s1 + $0x8] sm:$0xff]   ;;  %v1176_v9 = vld [vmem:[%s1589_s1 + $0x10] sm:$0xff]  }
   0x3   :  { %v1169_v2 = vld [vmem:[%s1589_s1 + $0xc0] sm:$0xff]   ;;  %1026 = vmatpush3.bf16.msra.mxu0 %v1168_v1  ;;  %v1173_v6 = vld [vmem:[%s1589_s1 + $0xc8] sm:$0xff]   ;;  %v1177_v10 = vld [vmem:[%s1589_s1 + $0xd0] sm:$0xff]  }
   0x4   :  { %v1170_v3 = vld [vmem:[%s1589_s1 + $0x80] sm:$0xff]   ;;  %1047 = vmatprep.subr.bf16.mxu1 %v1169_v2  ;;  %1027 = vmatprep.subr.bf16.mxu0 %v1171_v4  ;;  %v1174_v7 = vld [vmem:[%s1589_s1 + $0x88] sm:$0xff]   ;;  %v1178_v11 = vld [vmem:[%s1589_s1 + $0x90] sm:$0xff]  }
   0x5   :  { %1048 = vmatpush3.bf16.msra.mxu1 %v1170_v3  ;;  %v1179_v12 = vld [vmem:[%s1589_s1 + $0x58] sm:$0xff]   ;;  %v1183_v16 = vld [vmem:[%s1589_s1 + $0x60] sm:$0xff]   ;;  %v1187_v20 = vld [vmem:[%s1589_s1 + $0x68] sm:$0xff]  }
   0x6   :  { %1049 = vmatprep.subr.bf16.mxu1 %v1173_v6  ;;  %v1180_v13 = vld [vmem:[%s1589_s1 + $0x18] sm:$0xff]   ;;  %v1184_v17 = vld [vmem:[%s1589_s1 + $0x20] sm:$0xff]   ;;  %v1188_v21 = vld [vmem:[%s1589_s1 + $0x28] sm:$0xff]  }
   0x7   :  { %1028 = vmatpush3.bf16.msra.mxu0 %v1172_v5  ;;  %v1181_v14 = vld [vmem:[%s1589_s1 + $0xd8] sm:$0xff]   ;;  %v1185_v18 = vld [vmem:[%s1589_s1 + $0xe0] sm:$0xff]   ;;  %v1189_v22 = vld [vmem:[%s1589_s1 + $0xe8] sm:$0xff]  }
   0x8   :  { %1029 = vmatprep.subr.bf16.mxu0 %v1175_v8  ;;  %v1182_v15 = vld [vmem:[%s1589_s1 + $0x98] sm:$0xff]   ;;  %v1186_v19 = vld [vmem:[%s1589_s1 + $0xa0] sm:$0xff]   ;;  %v1190_v23 = vld [vmem:[%s1589_s1 + $0xa8] sm:$0xff]  }
   0x9   :  { %1050 = vmatpush3.bf16.msra.mxu1 %v1174_v7  ;;  %v1191_v24 = vld [vmem:[%s1589_s1 + $0x70] sm:$0xff]   ;;  %v1195_v28 = vld [vmem:[%s1589_s1 + $0x78] sm:$0xff]   ;;  %v1200_v32 = vld [vmem:[%s1588_s0 + $0x4] ss:$28 sps:$4 sm:$0xff]  }
   0xa   :  { %1051 = vmatprep.subr.bf16.mxu1 %v1177_v10  ;;  %v1192_v25 = vld [vmem:[%s1589_s1 + $0x30] sm:$0xff]   ;;  %v1196_v29 = vld [vmem:[%s1589_s1 + $0x38] sm:$0xff]   ;;  %512 = vmatprep.mubr.bf16.mxu0 %v1200_v32  ;;  %v1202_v34 = vld [vmem:[%s1589_s1 + $0x140] sm:$0xff]  }
   0xb   :  { %1030 = vmatpush3.bf16.msra.mxu0 %v1176_v9  ;;  %v1193_v26 = vld [vmem:[%s1589_s1 + $0xf0] sm:$0xff]   ;;  %v1197_v30 = vld [vmem:[%s1589_s1 + $0xf8] sm:$0xff]   ;;  %v1203_v35 = vld [vmem:[%s1588_s0 + $0x8] ss:$28 sps:$4 sm:$0xff]  }
   0xc   :  { %1031 = vmatprep.subr.bf16.mxu0 %v1179_v12  ;;  %v1194_v27 = vld [vmem:[%s1589_s1 + $0xb0] sm:$0xff]   ;;  %v1198_v31 = vld [vmem:[%s1588_s0] ss:$28 sps:$4 sm:$0xff]   ;;  %v1205_v36 = vld [vmem:[%s1588_s0 + $0xc] ss:$28 sps:$4 sm:$0xff]  }
   0xd   :  { %1052 = vmatpush3.bf16.msra.mxu1 %v1178_v11  ;;  %v1201_v33 = vld [vmem:[%s1589_s1 + $0xb8] sm:$0xff]   ;;  %v1206_v37 = vld [vmem:[%s1589_s1 + $0x100] sm:$0xff]   ;;  %553 = vmatprep.mubr.bf16.mxu1 %v1205_v36  ;;  %v1207_v39 = vld [vmem:[%s1589_s1 + $0x148] sm:$0xff]  }
   0xe   :  { %1053 = vmatprep.subr.bf16.mxu1 %v1181_v14  ;;  %v1208_v40 = vld [vmem:[%s1589_s1 + $0x108] sm:$0xff]   ;;  %v1209_v41 = vld [vmem:[%s1589_s1 + $0x150] sm:$0xff]   ;;  %v1211_v43 = vld [vmem:[%s1589_s1 + $0x158] sm:$0xff]  }
   0xf   :  { %1032 = vmatpush3.bf16.msra.mxu0 %v1180_v13  ;;  %v1210_v42 = vld [vmem:[%s1589_s1 + $0x110] sm:$0xff]   ;;  %v1212_v44 = vld [vmem:[%s1589_s1 + $0x118] sm:$0xff]   ;;  %v1213_v45 = vld [vmem:[%s1589_s1 + $0x160] sm:$0xff]  }
  0x10   :  { %1033 = vmatprep.subr.bf16.mxu0 %v1183_v16  ;;  %v1214_v46 = vld [vmem:[%s1589_s1 + $0x120] sm:$0xff]   ;;  %v1215_v47 = vld [vmem:[%s1589_s1 + $0x168] sm:$0xff]   ;;  %v1224_v50 = vld [vmem:[%s1588_s0 + $0x14] ss:$28 sps:$4 sm:$0xff]  }
  0x11   :  { %1054 = vmatpush3.bf16.msra.mxu1 %v1182_v15  ;;  %v1221_v48 = vld [vmem:[%s1589_s1 + $0x180] sm:$0xff]   ;;  %v1216_v49 = vld [vmem:[%s1589_s1 + $0x128] sm:$0xff]   ;;  %v1217_v51 = vld [vmem:[%s1589_s1 + $0x170] sm:$0xff]  }
  0x12   :  { %1055 = vmatprep.subr.bf16.mxu1 %v1185_v18  ;;  %v1225_v52 = vld [vmem:[%s1588_s0 + $0x18] ss:$28 sps:$4 sm:$0xff]  }
  0x13   :  { %1034 = vmatpush3.bf16.msra.mxu0 %v1184_v17  ;;  %v1218_v53 = vld [vmem:[%s1589_s1 + $0x130] sm:$0xff]   ;;  %v1219_v54 = vld [vmem:[%s1589_s1 + $0x178] sm:$0xff]  }
  0x14   :  { %1035 = vmatprep.subr.bf16.mxu0 %v1187_v20  ;;  %v1220_v55 = vld [vmem:[%s1589_s1 + $0x138] sm:$0xff]  }
  0x15   :  { %1056 = vmatpush3.bf16.msra.mxu1 %v1186_v19 }
  0x16   :  { %1057 = vmatprep.subr.bf16.mxu1 %v1189_v22 }
  0x17   :  { %1036 = vmatpush3.bf16.msra.mxu0 %v1188_v21 }
  0x18   :  { %1037 = vmatprep.subr.bf16.mxu0 %v1191_v24 }
  0x19   :  { %1058 = vmatpush3.bf16.msra.mxu1 %v1190_v23 }
  0x1a   :  { %1059 = vmatprep.subr.bf16.mxu1 %v1193_v26 }
  0x1b   :  { %1038 = vmatpush3.bf16.msra.mxu0 %v1192_v25 }
  0x1c   :  { %1039 = vmatprep.subr.bf16.mxu0 %v1195_v28 }
  0x1d   :  { %1060 = vmatpush3.bf16.msra.mxu1 %v1194_v27 }
  0x1e   :  { %1061 = vmatprep.subr.bf16.mxu1 %v1197_v30 }
  0x1f   :  { %1040 = vmatpush3.bf16.msra.mxu0 %v1196_v29 }
  0x20   :  { %1069 = vmatprep.subr.bf16.mxu0 %v1202_v34 }
  0x21   :  { %1062 = vmatpush3.bf16.msra.mxu1 %v1201_v33 }
  0x22   :  { %513 = vmatmul.mubr.bf16.vlgmr.msra.gmra.mrb[0].mxu0 %v1198_v31  ;;  %1112 = vmatprep.subr.bf16.mxu1 %v1266_v38 }
  0x23   :  { %1070 = vmatpush3.bf16.msra.mxu0 %v1206_v37  ;;  %594 = vmatprep.mubr.bf16.mxu0 %v1224_v50 }
  0x24   :  { %554 = vmatmul.mubr.bf16.vlgmr.msra.gmra.mrb[0].mxu1 %v1203_v35  ;;  %1071 = vmatprep.subr.bf16.mxu0 %v1207_v39 }
  0x25   :  { %1114 = vmatprep.mubr.msk.bf16.mxu1 %vm1267_vm0, %v1266_v38  ;;  %1113 = vmatpush3.bf16.msra.mxu1 %v1221_v48 }
  0x26   :  { %1118 = vmatprep.subr.bf16.mxu1 %v1266_v38 }
  0x27   :  { %1072 = vmatpush3.bf16.msra.mxu0 %v1208_v40 }
  0x28   :  { %1073 = vmatprep.subr.bf16.mxu0 %v1209_v41 }
  0x2b   :  { %1074 = vmatpush3.bf16.msra.mxu0 %v1210_v42 }
  0x2c   :  { %1075 = vmatprep.subr.bf16.mxu0 %v1211_v43  ;;  %1115 = vmatmul.mubr.msk.bf16.vlgmr.msra.gmra.mrb[4].mxu1 %vm476_vm1, %v1225_v52 }
  0x2d   :  { %1126 = vmatprep.mubr.msk.bf16.mxu1 %vm1267_vm0, %v1266_v38 }
  0x2f   :  { %1076 = vmatpush3.bf16.msra.mxu0 %v1212_v44 }
  0x30   :  { %1077 = vmatprep.subr.bf16.mxu0 %v1213_v45 }
  0x33   :  { %1078 = vmatpush3.bf16.msra.mxu0 %v1214_v46 }
  0x34   :  { %1079 = vmatprep.subr.bf16.mxu0 %v1215_v47 }
  0x37   :  { %1080 = vmatpush3.bf16.msra.mxu0 %v1216_v49 }
  0x38   :  { %1081 = vmatprep.subr.bf16.mxu0 %v1217_v51 }
  0x3b   :  { %1082 = vmatpush3.bf16.msra.mxu0 %v1218_v53 }
  0x3c   :  { %1083 = vmatprep.subr.bf16.mxu0 %v1219_v54 }
  0x3d   :  { %14 = vsyncpa [#allocation3], 0  ;;  %v1222_v56 = vld [vmem:[%s1588_s0 + $0x10] ss:$28 sps:$4 sm:$0xff]   ;;  %v1226_v57 = vld [vmem:[%s1591_s3] sm:$0xff]   ;;  %vm684_vm2 = vcmask 523264  }
  0x3e   :  { %1119 = vmatpush3.bf16.msra.mxu1 %v1226_v57  ;;  %v1227_v58 = vld [vmem:[%s1591_s3 + $0x8] sm:$0xff]   ;;  %v1228_v59 = vld [vmem:[%s1591_s3 + $0x10] sm:$0xff]   ;;  %v1229_v60 = vld [vmem:[%s1591_s3 + $0x18] sm:$0xff]  }
  0x3f   :  { %1084 = vmatpush3.bf16.msra.mxu0 %v1220_v55  ;;  %1120 = vmatprep.subr.bf16.mxu1 %v1266_v38  ;;  %v946_v62 = vld [vmem:[%s1590_s2] ss:$0 sm:$0xff]  ;;  %v1231_v30 = vld [vmem:[%s1593_s5 + $0x8] sm:$0xff]   ;;  %v1232_v31 = vld [vmem:[%s1593_s5 + $0x10] sm:$0xff]  }
  0x40   :  { %1150 = vmatprep.subr.bf16.mxu0 %v1266_v38  ;;  %v1230_v28 = vld [vmem:[%s1593_s5] sm:$0xff]   ;;  %v1233_v32 = vld [vmem:[%s1593_s5 + $0x18] sm:$0xff]   ;;  %v1235_v34 = vld [vmem:[%s1593_s5 + $0x28] sm:$0xff]  }
  0x41   :  { %v1234_v33 = vld [vmem:[%s1593_s5 + $0x20] sm:$0xff]   ;;  %v1236_v35 = vld [vmem:[%s1593_s5 + $0x30] sm:$0xff]   ;;  %v1237_v36 = vld [vmem:[%s1593_s5 + $0x38] sm:$0xff]  }
  0x42   :  { %595 = vmatmul.mubr.bf16.vlgmr.msra.gmra.mrb[4].mxu0 %v1222_v56  ;;  %1121 = vmatpush3.bf16.msra.mxu1 %v1227_v58  ;;  %v1238_v37 = vld [vmem:[%s1595_s7] sm:$0xff]   ;;  %v1239_v39 = vld [vmem:[%s1595_s7 + $0x8] sm:$0xff]   ;;  %v1240_v48 = vld [vmem:[%s1595_s7 + $0x10] sm:$0xff]  }
  0x43   :  { %1158 = vmatprep.mubr.msk.bf16.mxu0 %vm1267_vm0, %v1266_v38  ;;  %1122 = vmatprep.subr.bf16.mxu1 %v1266_v38  ;;  %v1004_v40 = vld [vmem:[%s1592_s4] ss:$0 sm:$0xff]  ;;  %v1241_v49 = vld [vmem:[%s1595_s7 + $0x18] sm:$0xff]   ;;  %s1268_s7 = smov [#allocation2]  }
  0x44   :  { %1151 = vmatpush3.bf16.msra.mxu0 %v1238_v37  ;;  %v1010_v50 = vld [vmem:[%s1594_s6] ss:$0 sm:$0xff]  ;;  %s935_s25 = sshll.u32 %s1268_s7, 4  ;;  %s936_s25 = int_to_ptr.vmem [resolvable:$true] %s935_s25 }
  0x45   :  { %1152 = vmatprep.subr.bf16.mxu0 %v1266_v38  ;;  %s1242_s6 = scalar_lea.vmem %s936_s25, 256  ;;  %p1247_p1 = scmp.lt.s32.totalorder %s936_s25, %s936_s25 }
  0x46   :  { %1123 = vmatpush3.bf16.msra.mxu1 %v1228_v59  ;;  %p1243_p0 = scmp.ne.s32.totalorder %s936_s25, %s1242_s6  ;;  %p1248_p2 = scmp.lt.s32.totalorder %s1242_s6, %s1242_s6 }
  0x47   :  { %1124 = vmatprep.subr.bf16.mxu1 %v1266_v38 }
  0x48   :  { %1153 = vmatpush3.bf16.msra.mxu0 %v1239_v39  ;;  %p1249_p3 = por %p1248_p2, %p1247_p1 }
  0x49   :  { %1154 = vmatprep.subr.bf16.mxu0 %v1266_v38 }
  0x4a   :  { %1125 = vmatpush3.bf16.msra.mxu1 %v1229_v60  ;;  %p1250_p4 = pnand %p1249_p3, %p1243_p0 }
  0x4b   :  { %1130 = vmatprep.subr.bf16.mxu1 %v1266_v38 }
  0x4c   :  { %1155 = vmatpush3.bf16.msra.mxu0 %v1240_v48 }
  0x4d   :  { %1156 = vmatprep.subr.bf16.mxu0 %v1266_v38 }
  0x50   :  { %1157 = vmatpush3.bf16.msra.mxu0 %v1241_v49 }
  0xf5   :  { %v1041_v61 = vpop.f32.mrb[0].mxu0 }
  0xf6   :  { %v1042_v63 = vpop.f32.mrb[1].mxu0 }
  0xf7   :  { %v1043_v0 = vadd.f32 %v1042_v63, %v1041_v61  ;;  %v1044_v1 = vpop.f32.mrb[2].mxu0  ;;  %v1063_v2 = vpop.f32.mrb[0].mxu1 }
  0xf8   :  { %v1045_v3 = vpop.f32.mrb[3].mxu0  ;;  %v1064_v6 = vpop.f32.mrb[1].mxu1 }
  0xf9   :  { %v515_v4 = vadd.f32 %v1043_v0, %v946_v62  ;;  %v1046_v5 = vadd.f32 %v1045_v3, %v1044_v1  ;;  %v1065_v7 = vadd.f32 %v1064_v6, %v1063_v2  ;;  %v1066_v8 = vpop.f32.mrb[2].mxu1 }
  0xfa   :  { %v1067_v10 = vpop.f32.mrb[3].mxu1 }
  0xfb   :  { %v518_v9 = vadd.f32 %v1046_v5, %v946_v62  ;;  %v556_v11 = vadd.f32 %v1065_v7, %v515_v4  ;;  %v1068_v12 = vadd.f32 %v1067_v10, %v1066_v8 }
  0xfd   :  { %v559_v13 = vadd.f32 %v1068_v12, %v518_v9 }
  0xff   :  { %v637_v14 = vpop.f32.mrb[4].mxu1 }
 0x100   :  { %v1116_v15 = vpop.f32.mrb[5].mxu1 }
 0x101   :  { %v640_v16 = vpop.f32.mrb[6].mxu1 }
 0x102   :  { %v1117_v17 = vpop.f32.mrb[7].mxu1 }
 0x115   :  { %v1085_v18 = vpop.f32.mrb[4].mxu0 }
 0x116   :  { %v1086_v19 = vpop.f32.mrb[5].mxu0 }
 0x117   :  { %v1087_v20 = vadd.f32 %v1086_v19, %v1085_v18  ;;  %v1088_v21 = vpop.f32.mrb[6].mxu0 }
 0x118   :  { %v1089_v22 = vpop.f32.mrb[7].mxu0 }
 0x119   :  { %v597_v23 = vadd.f32 %v1087_v20, %v556_v11  ;;  %v1090_v24 = vadd.f32 %v1089_v22, %v1088_v21 }
 0x11b   :  { %v638_v25 = vadd.f32 %v637_v14, %v597_v23  ;;  %v600_v26 = vadd.f32 %v1090_v24, %v559_v13 }
 0x11d   :  { %v641_v27 = vadd.f32 %v640_v16, %v600_v26 }
 0x11f   :  { %v644_v29 = vpack.c.bf16 %v641_v27, %v638_v25 }
 0x121   :  { %1127 = vmatmul.mubr.msk.bf16.vlgmr.msra.gmra.mrb[8].mxu1 %vm684_vm2, %v644_v29 }
 0x122   :  { %1131 = vmatpush3.bf16.msra.mxu1 %v1230_v28  ;;  %1146 = vmatprep.mubr.msk.bf16.mxu1 %vm1267_vm0, %v1266_v38 }
 0x123   :  { %1132 = vmatprep.subr.bf16.mxu1 %v1266_v38 }
 0x126   :  { %1133 = vmatpush3.bf16.msra.mxu1 %v1231_v30 }
 0x127   :  { %1134 = vmatprep.subr.bf16.mxu1 %v1266_v38 }
 0x12a   :  { %1135 = vmatpush3.bf16.msra.mxu1 %v1232_v31 }
 0x12b   :  { %1136 = vmatprep.subr.bf16.mxu1 %v1266_v38 }
 0x12e   :  { %1137 = vmatpush3.bf16.msra.mxu1 %v1233_v32 }
 0x12f   :  { %1138 = vmatprep.subr.bf16.mxu1 %v1266_v38 }
 0x132   :  { %1139 = vmatpush3.bf16.msra.mxu1 %v1234_v33 }
 0x133   :  { %1140 = vmatprep.subr.bf16.mxu1 %v1266_v38 }
 0x136   :  { %1141 = vmatpush3.bf16.msra.mxu1 %v1235_v34 }
 0x137   :  { %1142 = vmatprep.subr.bf16.mxu1 %v1266_v38 }
 0x13a   :  { %1143 = vmatpush3.bf16.msra.mxu1 %v1236_v35 }
 0x13b   :  { %1144 = vmatprep.subr.bf16.mxu1 %v1266_v38  ;;  %v1019_v38 = vld [vmem:[%s1596_s8] ss:$0 sm:$0xff] }
 0x13e   :  { %1145 = vmatpush3.bf16.msra.mxu1 %v1237_v36 }
 0x1f4   :  { %v722_v41 = vpop.f32.mrb[8].mxu1 }
 0x1f5   :  { %v1128_v42 = vpop.f32.mrb[9].mxu1  ;;  %v723_v44 = vadd.f32 %v1004_v40, %v722_v41 }
 0x1f6   :  { %v725_v43 = vpop.f32.mrb[10].mxu1 }
 0x1f7   :  { %v726_v45 = vadd.f32 %v1004_v40, %v725_v43  ;;  %v1129_v46 = vpop.f32.mrb[11].mxu1 }
 0x1f9   :  { %v729_v47 = vpack.c.bf16 %v726_v45, %v723_v44 }
 0x1fb   :  { %1147 = vmatmul.mubr.bf16.vlgmr.msra.gmra.mrb[12].mxu1 %v729_v47 }
 0x2ce   :  { %v835_v51 = vpop.f32.mrb[12].mxu1 }
 0x2cf   :  { %v1148_v52 = vpop.f32.mrb[13].mxu1  ;;  %v836_v54 = vadd.f32 %v1010_v50, %v835_v51 }
 0x2d0   :  { %v838_v53 = vpop.f32.mrb[14].mxu1 }
 0x2d1   :  { %v839_v55 = vadd.f32 %v1010_v50, %v838_v53  ;;  %v1149_v56 = vpop.f32.mrb[15].mxu1 }
 0x2d3   :  { %v842_v57 = vpack.c.bf16 %v839_v55, %v836_v54 }
 0x2d5   :  { %1159 = vmatmul.mubr.msk.bf16.vlgmr.msra.gmra.mrb[8].mxu0 %vm684_vm2, %v842_v57 }
 0x3a8   :  { %v919_v58 = vpop.f32.mrb[8].mxu0 }
 0x3a9   :  { %v920_v59 = vadd.f32 %v1019_v38, %v919_v58  ;;  %v1160_v60 = vpop.f32.mrb[9].mxu0 }
 0x3aa   :  { %v922_v61 = vpop.f32.mrb[10].mxu0 }
 0x3ab   :  { %v926_v62 = vmax.f32 %v920_v59, 0.0  ;;  %v923_v63 = vadd.f32 %v1019_v38, %v922_v61  ;;  %v1161_v0 = vpop.f32.mrb[11].mxu0 }
 0x3ad   :  { %928 = vst [vmem:[#allocation2] sm:$0xff] %v926_v62  ;;  %v927_v1 = vmax.f32 %v923_v63, 0.0 }
 0x3af   :  { %929 = vst [vmem:[#allocation2 + $0x8] sm:$0xff] %v927_v1 }
 0x3b0   :  { %1253 = shalt.err (!%p1250_p4)
}
 0x3b1   :  { %s1254_s27 = scalar_lea.hbm %s1597_s9, 256 }
 0x3b2   :  { %p1255_p5 = scmp.ne.s32.totalorder %s1597_s9, %s1254_s27  ;;  %p1258_p6 = scmp.lt.u32.totalorder %s1254_s27, %s1597_s9 }
 0x3b4   :  { %p1260_p7 = pnand %p1258_p6, %p1255_p5 }
 0x3b6   :  { %1263 = shalt.err (!%p1260_p7)
}
 0x3b7   :  { %s1269_s11 = smov 128   ;;  %s1270_s12 = smov 8  }
 0x3b8   :  { %941 = dma.vmem_to_hbm [thread:$0]  %s936_s25, 256, %s1597_s9, [#allocation3], %s1269_s11, %s1269_s11, %s1270_s12  }
 0x3b9   :  { %1264 = dma.done.wait [#allocation3], 256  }
 0x3ba   :  { %1265 = vsyncadd [#allocation3], 4294967040 }
 0x3bb   :  { %945 = vsyncpa [#allocation3], 1 }

</bundles_post_ra>
